<compile_context>
chip_gen: v7x
topology: tpu7x:2x2x1
jax: 0.10.0
libtpu: 0.0.40
codegen_flags: <defaults>
</compile_context>

<pallas_src>
import functools
import math

import jax
import jax.numpy as jnp
from jax import lax
from jax.experimental import pallas as pl
from jax.experimental.pallas import tpu as pltpu


# ----------------------------------------------------------------------------
# Tiling policy (shared by weight preparation and the matmul wrapper)
# ----------------------------------------------------------------------------
_TN_TILE = 256     # N tile when N is large
_TK_TILE = 512     # K tile when K is large
_K_SINGLE = 2048   # Kp <= this -> single K block


def _round_up(x, m):
    return (x + m - 1) // m * m


def _plan_m(M):
    Mp = _round_up(M, 16)              # bf16 packs 2 rows / sublane
    if Mp <= 256:
        return Mp, Mp
    if Mp <= 1024:                     # >=2 M blocks -> both v7x TCs get work
        Mp = _round_up(M, 256)
        return Mp, 256
    Mp = _round_up(M, 512)             # big M: larger tile, less weight refetch
    return Mp, 512


def _plan_n(N):
    if N <= _TN_TILE:
        Np = _round_up(N, 128)
        return Np, Np
    return _round_up(N, _TN_TILE), _TN_TILE


def _plan_k(K):
    Kp = _round_up(K, 128)             # always lane/sublane aligned
    if Kp <= _K_SINGLE:
        return Kp, Kp
    Kp = _round_up(K, _TK_TILE)
    return Kp, _TK_TILE


def _pair(v):
    return tuple(v) if isinstance(v, (tuple, list)) else (v, v)


# ----------------------------------------------------------------------------
# Fused matmul + bias + (optional) ReLU Pallas kernel
#   bf16 operands on the MXU, f32 accumulation in VMEM scratch, bias folded
#   into k==0, bf16 output written once on the last K step.
# ----------------------------------------------------------------------------
def _mm_kernel(x_ref, w_ref, b_ref, o_ref, acc_ref, *, apply_relu):
    k = pl.program_id(2)
    part = jnp.dot(x_ref[...], w_ref[...], preferred_element_type=jnp.float32)

    @pl.when(k == 0)
    def _():
        acc_ref[...] = part + b_ref[...]

    @pl.when(k != 0)
    def _():
        acc_ref[...] = acc_ref[...] + part

    @pl.when(k == pl.num_programs(2) - 1)
    def _():
        y = acc_ref[...]
        if apply_relu:
            y = jnp.maximum(y, 0.0)
        o_ref[...] = y.astype(o_ref.dtype)


def matmul_bias_act(x, w, b, K, N, apply_relu):
    """maybe_relu(x @ w + b) -> bf16.

    x: (M, K)   bf16 (true K columns, un-padded)
    w: (Kp, Np) bf16 (pre-padded at construction)
    b: (1, Np)  f32
    returns (M, N) bf16
    """
    M = x.shape[0]
    Kp, Np = w.shape
    Mp, TM = _plan_m(M)
    kp_chk, TK = _plan_k(K)
    np_chk, TN = _plan_n(N)
    assert kp_chk == Kp and np_chk == Np, "weight not padded per tiling plan"

    x = x.astype(jnp.bfloat16)
    if Mp != M or Kp != K:
        x = jnp.pad(x, ((0, Mp - M), (0, Kp - K)))

    grid = (Mp // TM, Np // TN, Kp // TK)

    cost = pl.CostEstimate(
        flops=2 * Mp * Kp * Np,
        transcendentals=0,
        bytes_accessed=int(Mp * Kp * 2 * (Np // TN)
                           + Kp * Np * 2 * (Mp // TM)
                           + Mp * Np * 2 + Np * 4),
    )

    out = pl.pallas_call(
        functools.partial(_mm_kernel, apply_relu=apply_relu),
        out_shape=jax.ShapeDtypeStruct((Mp, Np), jnp.bfloat16),
        grid_spec=pltpu.PrefetchScalarGridSpec(
            num_scalar_prefetch=0,
            grid=grid,
            in_specs=[
                pl.BlockSpec((TM, TK), lambda i, j, k: (i, k)),
                pl.BlockSpec((TK, TN), lambda i, j, k: (k, j)),
                pl.BlockSpec((1, TN), lambda i, j, k: (0, j)),
            ],
            out_specs=pl.BlockSpec((TM, TN), lambda i, j, k: (i, j)),
            scratch_shapes=[pltpu.VMEM((TM, TN), jnp.float32)],
        ),
        compiler_params=pltpu.CompilerParams(
            dimension_semantics=("parallel", "parallel", "arbitrary")),
        cost_estimate=cost,
    )(x, w, b)

    if Mp != M or Np != N:
        out = out[:M, :N]
    return out


# ----------------------------------------------------------------------------
# Conv2d (1x1 -> pure reshape, else bf16 im2col) feeding the Pallas matmul
# ----------------------------------------------------------------------------
def conv2d_fused(x_nhwc, p, stride, padding, relu):
    N, H, W, Cin = x_nhwc.shape
    KH, KW = p['kh'], p['kw']
    sh, sw = _pair(stride)
    ph, pw = _pair(padding)
    Ho = (H + 2 * ph - KH) // sh + 1
    Wo = (W + 2 * pw - KW) // sw + 1

    xb = x_nhwc.astype(jnp.bfloat16)        # no-op when activations already bf16
    if (KH, KW, sh, sw, ph, pw) == (1, 1, 1, 1, 0, 0):
        xm = xb.reshape(N * H * W, Cin)      # no im2col for 1x1
    else:
        xp = jnp.pad(xb, ((0, 0), (ph, ph), (pw, pw), (0, 0)))
        patches = [xp[:, kh:kh + sh * (Ho - 1) + 1:sh,
                      kw:kw + sw * (Wo - 1) + 1:sw, :]
                   for kh in range(KH) for kw in range(KW)]
        xm = jnp.concatenate(patches, axis=-1).reshape(
            N * Ho * Wo, KH * KW * Cin)

    y = matmul_bias_act(xm, p['w'], p['b'], p['K'], p['N'], relu)
    return y.reshape(N, Ho, Wo, p['N'])


# ----------------------------------------------------------------------------
# Pooling (plain-JAX glue; matches PyTorch semantics incl. ceil_mode)
# ----------------------------------------------------------------------------
def _pool_out(size, k, s, p, ceil_mode):
    if ceil_mode:
        out = -(-(size + 2 * p - k) // s) + 1
        if (out - 1) * s >= size + p:
            out -= 1
    else:
        out = (size + 2 * p - k) // s + 1
    return out


def max_pool2d(x, k, s, p, ceil_mode=False):
    N, H, W, C = x.shape
    Ho = _pool_out(H, k, s, p, ceil_mode)
    Wo = _pool_out(W, k, s, p, ceil_mode)
    prh = max(0, (Ho - 1) * s + k - H - p)
    prw = max(0, (Wo - 1) * s + k - W - p)
    init = jnp.asarray(-jnp.inf, dtype=x.dtype)
    return lax.reduce_window(
        x, init, lax.max,
        window_dimensions=(1, k, k, 1), window_strides=(1, s, s, 1),
        padding=((0, 0), (p, prh), (p, prw), (0, 0)))


def avg_pool2d_3x3_s1_p1(x):
    init = jnp.asarray(0.0, dtype=x.dtype)
    s = lax.reduce_window(
        x, init, lax.add,
        window_dimensions=(1, 3, 3, 1), window_strides=(1, 1, 1, 1),
        padding=((0, 0), (1, 1), (1, 1), (0, 0)))
    return s / 9.0   # count_include_pad=True (PyTorch default)


# ----------------------------------------------------------------------------
# Parameter construction (xavier weights, BN folded, weights prepped once)
# ----------------------------------------------------------------------------
_BN_EPS = 1e-3


class ParamGen:
    def __init__(self, seed):
        self.key = jax.random.PRNGKey(seed)

    def next(self):
        self.key, sub = jax.random.split(self.key)
        return sub


def _xavier(pg, cout, cin, kh, kw):
    fan_in, fan_out = cin * kh * kw, cout * kh * kw
    std = math.sqrt(2.0 / (fan_in + fan_out))
    return std * jax.random.normal(pg.next(), (cout, cin, kh, kw), jnp.float32)


def make_raw(pg, cin, cout, ksize, bn=True):
    """Folded (K, N) f32 weight + (N,) bias for conv(+BN eval)."""
    kh, kw = _pair(ksize)
    w = _xavier(pg, cout, cin, kh, kw)
    # BN defaults: gamma=1, beta=0, running_mean=0, running_var=1.
    scale = 1.0 / math.sqrt(1.0 + _BN_EPS) if bn else 1.0
    wm = jnp.transpose(w, (2, 3, 1, 0)).reshape(kh * kw * cin, cout) * scale
    bias = jnp.zeros((cout,), jnp.float32)
    return {'wm': wm, 'bias': bias, 'kh': kh, 'kw': kw}


def finalize(raw):
    """Pad to the tiling plan and cast to bf16 ONCE, at construction time."""
    wm, bias = raw['wm'], raw['bias']
    K, N = wm.shape
    Kp, _ = _plan_k(K)
    Np, _ = _plan_n(N)
    return {'w': jnp.pad(wm, ((0, Kp - K), (0, Np - N))).astype(jnp.bfloat16),
            'b': jnp.pad(bias, (0, Np - N)).reshape(1, Np).astype(jnp.float32),
            'K': K, 'N': N, 'kh': raw['kh'], 'kw': raw['kw']}


def fuse_raws(raws):
    """Fuse same-input same-kernel 1x1 convs into one wider matmul."""
    wm = jnp.concatenate([r['wm'] for r in raws], axis=1)
    bias = jnp.concatenate([r['bias'] for r in raws], axis=0)
    p = finalize({'wm': wm, 'bias': bias,
                  'kh': raws[0]['kh'], 'kw': raws[0]['kw']})
    p['splits'] = [int(r['wm'].shape[1]) for r in raws]
    return p


def make_basic(pg, cin, cout, ksize):
    return finalize(make_raw(pg, cin, cout, ksize, bn=True))


def make_plain(pg, cin, cout, ksize):
    return finalize(make_raw(pg, cin, cout, ksize, bn=False))


def _split_channels(y, splits):
    outs, off = [], 0
    for s in splits:
        outs.append(y[..., off:off + s])
        off += s
    return outs


# ----------------------------------------------------------------------------
# Inception blocks
# ----------------------------------------------------------------------------
def make_inception_a(pg, cin, pool_features):
    b1x1 = make_raw(pg, cin, 64, 1)
    b5_1 = make_raw(pg, cin, 48, 1)
    b5_2 = make_raw(pg, 48, 64, 5)
    d1 = make_raw(pg, cin, 64, 1)
    d2 = make_raw(pg, 64, 96, 3)
    d3 = make_raw(pg, 96, 96, 3)
    bpool = make_raw(pg, cin, pool_features, 1)
    return {'fused1x1': fuse_raws([b1x1, b5_1, d1]),
            'b5_2': finalize(b5_2), 'd2': finalize(d2), 'd3': finalize(d3),
            'bpool': finalize(bpool)}


def inception_a(p, x):
    fused = conv2d_fused(x, p['fused1x1'], 1, 0, relu=True)
    b1, b5, d = _split_channels(fused, p['fused1x1']['splits'])
    b5 = conv2d_fused(b5, p['b5_2'], 1, 2, relu=True)
    d = conv2d_fused(d, p['d2'], 1, 1, relu=True)
    d = conv2d_fused(d, p['d3'], 1, 1, relu=True)
    bp = avg_pool2d_3x3_s1_p1(x)
    bp = conv2d_fused(bp, p['bpool'], 1, 0, relu=True)
    return jnp.concatenate([b1, b5, d, bp], axis=-1)


def make_inception_b(pg, cin):
    return {'b3': make_basic(pg, cin, 384, 3),
            'd1': make_basic(pg, cin, 64, 1),
            'd2': make_basic(pg, 64, 96, 3),
            'd3': make_basic(pg, 96, 96, 3)}


def inception_b(p, x, stride, padding):
    b3 = conv2d_fused(x, p['b3'], stride, padding, relu=True)
    d = conv2d_fused(x, p['d1'], 1, 0, relu=True)
    d = conv2d_fused(d, p['d2'], 1, 1, relu=True)
    d = conv2d_fused(d, p['d3'], stride, padding, relu=True)
    bp = max_pool2d(x, 3, stride, 1, ceil_mode=False)
    return jnp.concatenate([b3, d, bp], axis=-1)


def make_inception_c(pg, cin, c7):
    b1x1 = make_raw(pg, cin, 192, 1)
    b7_1 = make_raw(pg, cin, c7, 1)
    b7_2 = make_raw(pg, c7, c7, (1, 7))
    b7_3 = make_raw(pg, c7, 192, (7, 1))
    d1 = make_raw(pg, cin, c7, 1)
    d2 = make_raw(pg, c7, c7, (7, 1))
    d3 = make_raw(pg, c7, c7, (1, 7))
    d4 = make_raw(pg, c7, c7, (7, 1))
    d5 = make_raw(pg, c7, 192, (1, 7))
    bpool = make_raw(pg, cin, 192, 1)
    return {'fused1x1': fuse_raws([b1x1, b7_1, d1]),
            'b7_2': finalize(b7_2), 'b7_3': finalize(b7_3),
            'd2': finalize(d2), 'd3': finalize(d3),
            'd4': finalize(d4), 'd5': finalize(d5),
            'bpool': finalize(bpool)}


def inception_c(p, x):
    fused = conv2d_fused(x, p['fused1x1'], 1, 0, relu=True)
    b1, b7, d = _split_channels(fused, p['fused1x1']['splits'])
    b7 = conv2d_fused(b7, p['b7_2'], 1, (0, 3), relu=True)
    b7 = conv2d_fused(b7, p['b7_3'], 1, (3, 0), relu=True)
    d = conv2d_fused(d, p['d2'], 1, (3, 0), relu=True)
    d = conv2d_fused(d, p['d3'], 1, (0, 3), relu=True)
    d = conv2d_fused(d, p['d4'], 1, (3, 0), relu=True)
    d = conv2d_fused(d, p['d5'], 1, (0, 3), relu=True)
    bp = avg_pool2d_3x3_s1_p1(x)
    bp = conv2d_fused(bp, p['bpool'], 1, 0, relu=True)
    return jnp.concatenate([b1, b7, d, bp], axis=-1)


# ----------------------------------------------------------------------------
# Full InceptionSpg model
# ----------------------------------------------------------------------------
def make_params(num_classes=10, seed=0):
    pg = ParamGen(seed)
    return {
        'Conv2d_1a_3x3': make_basic(pg, 3, 32, 3),
        'Conv2d_2a_3x3': make_basic(pg, 32, 32, 3),
        'Conv2d_2b_3x3': make_basic(pg, 32, 64, 3),
        'Conv2d_3b_1x1': make_basic(pg, 64, 80, 1),
        'Conv2d_4a_3x3': make_basic(pg, 80, 192, 3),
        'Mixed_5b': make_inception_a(pg, 192, 32),
        'Mixed_5c': make_inception_a(pg, 256, 64),
        'Mixed_5d': make_inception_a(pg, 288, 64),
        'Mixed_6a': make_inception_b(pg, 288),
        'Mixed_6b': make_inception_c(pg, 768, 128),
        'Mixed_6c': make_inception_c(pg, 768, 160),
        'Mixed_6d': make_inception_c(pg, 768, 160),
        'Mixed_6e': make_inception_c(pg, 768, 192),
        'SPG_A3_1b': make_plain(pg, 768, 1024, 3),
        'SPG_A3_2b': make_plain(pg, 1024, 1024, 3),
        'SPG_A4': make_plain(pg, 1024, num_classes, 1),
        'SPG_B_1a': make_plain(pg, 288, 512, 3),
        'SPG_B_2a': make_plain(pg, 768, 512, 3),
        'SPG_B_shared_0': make_plain(pg, 512, 512, 3),
        'SPG_B_shared_1': make_plain(pg, 512, 1, 1),
        'SPG_C_0': make_plain(pg, 1024, 512, 3),
        'SPG_C_1': make_plain(pg, 512, 1, 1),
    }


def spg_b_shared(params, x):
    x = conv2d_fused(x, params['SPG_B_shared_0'], 1, 1, relu=True)
    x = conv2d_fused(x, params['SPG_B_shared_1'], 1, 0, relu=False)
    return x


def inception_spg_forward(params, x_nchw, large_feature_map=False):
    # Eval-mode forward (dropout = identity, BN folded running stats).
    x = jnp.transpose(x_nchw, (0, 2, 3, 1)).astype(jnp.bfloat16)   # -> NHWC

    x = conv2d_fused(x, params['Conv2d_1a_3x3'], 2, 1, relu=True)
    x = conv2d_fused(x, params['Conv2d_2a_3x3'], 1, 0, relu=True)
    x = conv2d_fused(x, params['Conv2d_2b_3x3'], 1, 1, relu=True)
    x = max_pool2d(x, 3, 2, 1, ceil_mode=True)
    x = conv2d_fused(x, params['Conv2d_3b_1x1'], 1, 0, relu=True)
    x = conv2d_fused(x, params['Conv2d_4a_3x3'], 1, 0, relu=True)
    x = max_pool2d(x, 3, 2, 1, ceil_mode=True)
    x = inception_a(params['Mixed_5b'], x)
    x = inception_a(params['Mixed_5c'], x)
    x = inception_a(params['Mixed_5d'], x)
    if not large_feature_map:
        x = max_pool2d(x, 3, 2, 0, ceil_mode=True)

    logits_b1 = conv2d_fused(x, params['SPG_B_1a'], 1, 1, relu=True)
    logits_b1 = spg_b_shared(params, logits_b1)

    x = inception_b(params['Mixed_6a'], x, stride=1, padding=1)
    x = inception_c(params['Mixed_6b'], x)
    x = inception_c(params['Mixed_6c'], x)
    x = inception_c(params['Mixed_6d'], x)
    feat = inception_c(params['Mixed_6e'], x)

    logits_b2 = conv2d_fused(x, params['SPG_B_2a'], 1, 1, relu=True)
    logits_b2 = spg_b_shared(params, logits_b2)

    x = feat                                             # dropout (eval) = id
    x = conv2d_fused(x, params['SPG_A3_1b'], 1, 1, relu=True)
    x = conv2d_fused(x, params['SPG_A3_2b'], 1, 1, relu=True)
    feat_map = conv2d_fused(x, params['SPG_A4'], 1, 0, relu=False)

    logits_c = conv2d_fused(x, params['SPG_C_0'], 1, 1, relu=True)
    logits_c = conv2d_fused(logits_c, params['SPG_C_1'], 1, 0, relu=False)

    logits = jnp.mean(feat_map.astype(jnp.float32), axis=(1, 2))   # GAP 1x1
    labels = jnp.argmax(logits, axis=1)

    # TODO(synk): spg.compute_attention is not defined in the provided source;
    #             attention / fused_attention left as None instead of faking it.
    to_nchw = lambda t: jnp.transpose(t, (0, 3, 1, 2)).astype(jnp.float32)
    return {
        'attention': None,
        'fused_attention': None,
        'logits': logits,
        'logits_b1': to_nchw(logits_b1),
        'logits_b2': to_nchw(logits_b2),
        'logits_c': to_nchw(logits_c),
        'labels': labels,
    }


# ----------------------------------------------------------------------------
if __name__ == "__main__":
    num_classes = 10
    params = make_params(num_classes=num_classes, seed=0)

    key = jax.random.PRNGKey(0)
    x = jax.random.normal(key, (2, 3, 32, 32), jnp.float32)   # NCHW, small image

    out = inception_spg_forward(params, x)
    out = {k: v for k, v in out.items() if v is not None}
    jax.block_until_ready(out)
    print("KERNEL_OK")
</pallas_src>

<mosaic_0001>
module attributes {stable_mosaic.version = 11 : i64} {
  func.func @_mm_kernel(%arg0: i32, %arg1: i32, %arg2: i32, %arg3: memref<256x128xbf16, #tpu.memory_space<vmem>>, %arg4: memref<128x128xbf16, #tpu.memory_space<vmem>>, %arg5: memref<1x128xf32, #tpu.memory_space<vmem>>, %arg6: memref<256x128xbf16, #tpu.memory_space<vmem>>, %arg7: memref<256x128xf32, #tpu.memory_space<vmem>>) attributes {dimension_semantics = [#tpu.dimension_semantics<parallel>, #tpu.dimension_semantics<parallel>, #tpu.dimension_semantics<arbitrary>], iteration_bounds = array<i64: 2, 1, 1>, scalar_prefetch = 0 : i64, scratch_operands = 1 : i64, tpu.core_type = #tpu.core_type<tc>, window_params = [{transform_indices = @transform_0, window_bounds = array<i64: 256, 128>}, {transform_indices = @transform_1, window_bounds = array<i64: 128, 128>}, {transform_indices = @transform_2, window_bounds = array<i64: 1, 128>}, {transform_indices = @transform_3, window_bounds = array<i64: 256, 128>}]} {
    %c0 = arith.constant 0 : index
    %c0_0 = arith.constant 0 : index
    %0 = vector.load %arg3[%c0, %c0_0] : memref<256x128xbf16, #tpu.memory_space<vmem>>, vector<256x128xbf16>
    %c0_1 = arith.constant 0 : index
    %c0_2 = arith.constant 0 : index
    %1 = vector.load %arg4[%c0_1, %c0_2] : memref<128x128xbf16, #tpu.memory_space<vmem>>, vector<128x128xbf16>
    %cst = arith.constant dense<0.000000e+00> : vector<256x128xf32>
    %2 = tpu.matmul %0, %1, %cst {dimension_numbers = #tpu.dot_dimension_numbers<[1], [0], [0], [1], [0, 0, 1, 1], [], []>} : vector<256x128xbf16>, vector<128x128xbf16>, vector<256x128xf32> -> vector<256x128xf32>
    %c0_i32 = arith.constant 0 : i32
    %3 = arith.cmpi eq, %arg2, %c0_i32 : i32
    %4 = arith.extui %3 : i1 to i32
    %c0_i32_3 = arith.constant 0 : i32
    %5 = arith.cmpi ne, %4, %c0_i32_3 : i32
    scf.if %5 {
      %c0_8 = arith.constant 0 : index
      %c0_9 = arith.constant 0 : index
      %12 = vector.load %arg5[%c0_8, %c0_9] : memref<1x128xf32, #tpu.memory_space<vmem>>, vector<1x128xf32>
      %13 = vector.broadcast %12 : vector<1x128xf32> to vector<256x128xf32>
      %14 = arith.addf %2, %13 : vector<256x128xf32>
      %c0_10 = arith.constant 0 : index
      %c0_11 = arith.constant 0 : index
      %15 = vector.load %arg7[%c0_10, %c0_11] : memref<256x128xf32, #tpu.memory_space<vmem>>, vector<256x128xf32>
      tpu.vector_store %arg7[%c0_10, %c0_11], %14 {strides = array<i32>} : memref<256x128xf32, #tpu.memory_space<vmem>>, vector<256x128xf32>,
    } else {
    }
    %c0_i32_4 = arith.constant 0 : i32
    %6 = arith.cmpi ne, %arg2, %c0_i32_4 : i32
    %7 = arith.extui %6 : i1 to i32
    %c0_i32_5 = arith.constant 0 : i32
    %8 = arith.cmpi ne, %7, %c0_i32_5 : i32
    scf.if %8 {
      %c0_8 = arith.constant 0 : index
      %c0_9 = arith.constant 0 : index
      %12 = vector.load %arg7[%c0_8, %c0_9] : memref<256x128xf32, #tpu.memory_space<vmem>>, vector<256x128xf32>
      %13 = arith.addf %12, %2 : vector<256x128xf32>
      %c0_10 = arith.constant 0 : index
      %c0_11 = arith.constant 0 : index
      %14 = vector.load %arg7[%c0_10, %c0_11] : memref<256x128xf32, #tpu.memory_space<vmem>>, vector<256x128xf32>
      tpu.vector_store %arg7[%c0_10, %c0_11], %13 {strides = array<i32>} : memref<256x128xf32, #tpu.memory_space<vmem>>, vector<256x128xf32>,
    } else {
    }
    %c0_i32_6 = arith.constant 0 : i32
    %9 = arith.cmpi eq, %arg2, %c0_i32_6 : i32
    %10 = arith.extui %9 : i1 to i32
    %c0_i32_7 = arith.constant 0 : i32
    %11 = arith.cmpi ne, %10, %c0_i32_7 : i32
    scf.if %11 {
      %c0_8 = arith.constant 0 : index
      %c0_9 = arith.constant 0 : index
      %12 = vector.load %arg7[%c0_8, %c0_9] : memref<256x128xf32, #tpu.memory_space<vmem>>, vector<256x128xf32>
      %cst_10 = arith.constant 0.000000e+00 : f32
      %13 = vector.broadcast %cst_10 : f32 to vector<256x128xf32>
      %14 = arith.maximumf %12, %13 : vector<256x128xf32>
      %15 = arith.truncf %14 : vector<256x128xf32> to vector<256x128xbf16>
      %c0_11 = arith.constant 0 : index
      %c0_12 = arith.constant 0 : index
      %16 = vector.load %arg6[%c0_11, %c0_12] : memref<256x128xbf16, #tpu.memory_space<vmem>>, vector<256x128xbf16>
      tpu.vector_store %arg6[%c0_11, %c0_12], %15 {strides = array<i32>} : memref<256x128xbf16, #tpu.memory_space<vmem>>, vector<256x128xbf16>,
    } else {
    }
    return
  }
  func.func @transform_0(%arg0: i32, %arg1: i32, %arg2: i32) -> (i32, i32) {
    %c0_i32 = arith.constant 0 : i32
    return %arg0, %arg2 : i32, i32
  }
  func.func @transform_1(%arg0: i32, %arg1: i32, %arg2: i32) -> (i32, i32) {
    %c0_i32 = arith.constant 0 : i32
    return %arg2, %arg1 : i32, i32
  }
  func.func @transform_2(%arg0: i32, %arg1: i32, %arg2: i32) -> (i32, i32) {
    %c0_i32 = arith.constant 0 : i32
    %c0_i32_0 = arith.constant 0 : i32
    return %c0_i32, %arg1 : i32, i32
  }
  func.func @transform_3(%arg0: i32, %arg1: i32, %arg2: i32) -> (i32, i32) {
    %c0_i32 = arith.constant 0 : i32
    return %arg0, %arg1 : i32, i32
  }
}

</mosaic_0001>

<bundles_post_ra>
// kernel: tpu_custom_call.1
= control target key start
LH: loop header
LB: loop body
LE: loop exit
PB: predicated region body
PF: predicated region fallthrough
CT: control target
= control target key end

     0   :  { %8 = vsyncpa [#allocation4], 0  ;;  %s2010_s0 = inlined_call_operand.hbm [shape: bf16[512,128], index: 0, kind: input, shape index: {}]   ;;  %s2011_s1 = inlined_call_operand.hbm [shape: bf16[128,128], index: 1, kind: input, shape index: {}]   ;;  %s2012_s2 = inlined_call_operand.vmem [shape: f32[1,128], index: 2, kind: input, shape index: {}]   ;;  %s2013_s3 = inlined_call_operand.hbm [shape: bf16[512,128], index: 3, kind: output, shape index: {}]  }
   0x1   :  { %10 = vsyncpa [#allocation4 + $0x1], 0 }
   0x2   :  { %11 = vsyncpa [#allocation7], 0 }
   0x3   :  { %12 = vsyncpa [#allocation5], 0 }
   0x4   :  { %14 = vsyncpa [#allocation5 + $0x1], 0  ;;  %s1707_s12 = smov 0   ;;  %s1709_s13 = smov 0  }
   0x5   :  { %s1711_s14 = smov 0   ;;  %s1713_s15 = smov 0  }
   0x6   :  { %s1715_s16 = smov 0   ;;  %s1717_s17 = smov 0  }
   0x7 LB: > { %s1141_s18 = sadd.s32 4294967295, %s1678_s17   ;;  %s1142_s19 = sadd.s32 4294967294, %s1678_s17   ;;  %s1678_s17 = sphi %s1717_s17, %s20_s17   ;;  %s1674_s16 = sphi %s1715_s16, %s2037_s16   ;;  %s1670_s15 = sphi %s1713_s15, %s2036_s15   ;;  %s1666_s14 = sphi %s1711_s14, %s2035_s14   ;;  %s1662_s13 = sphi %s1709_s13, %s2034_s13   ;;  %s1658_s12 = sphi %s1707_s12, %s2033_s12  }
   0x8   : > { %p61_p0 = scmp.ne.s32.totalorder %s1662_s13, %s1658_s12  ;;  %p1741_p1 = scmp.eq.s32.totalorder %s1141_s18, 0 }
   0x9   : > { %p1745_p2 = scmp.eq.s32.totalorder %s1141_s18, 1  ;;  %p147_p3 = scmp.eq.s32.totalorder %s1142_s19, 1 }
   0xa   : > { %s2018_s20 = scalar_select %p1741_p1, 1, 0 }
   0xb   : > { %s2019_s21 = scalar_select %p1745_p2, 1, 0 }
   0xc   : > { %p1751_p4 = por %p1741_p1, %p61_p0  ;;  %p1143_p5 = scmp.ge.s32.totalorder %s1678_s17, 1 }
   0xd   : > { %p1756_p6 = por %p147_p3, %p61_p0  ;;  %p154_p7 = scmp.lt.s32.totalorder %s1678_s17, 3 }
   0xe   : > { %s2020_s22 = scalar_select %p1751_p4, 1, 0 }
   0xf   : > { %s2021_s23 = scalar_select %p1756_p6, 1, 0 }
  0x10   : > { %p1761_p8 = pnand %p1143_p5, %p154_p7  ;;  %s1680_s25 = smov [#allocation6]  }
  0x11   : > { %s170_s26 = sshll.u32 %s1680_s25, 4  ;;  %s39_s28 = sadd.s32 1, %s1674_s16  ;;  %s171_s26 = int_to_ptr.vmem [resolvable:$true] %s170_s26 }
  0x12   : > { %s2022_s24 = scalar_select %p1761_p8, 1, 0 }
  0x13   : > { %p1441_p9 = pneg %p1761_p8  ;;  %s1534_s4 = scalar_lea.hbm %s2011_s1, 1024 }
  0x14   : > { %p1535_p12 = scmp.ne.s32.totalorder %s2011_s1, %s1534_s4  ;;  %p1541_p5 = scmp.lt.u32.totalorder %s1534_s4, %s2011_s1 }
  0x15   : > { %p1770_p11 = pnand %p1441_p9, %p1741_p1 }
  0x17   : > { %p1536_p13 = pneg %p1770_p11 }
  0x19   : > { %p1537_p0 = pnand %p1536_p13, %p1535_p12 }
  0x1b   : > { %p1538_p3 = pneg %p1537_p0 }
  0x1d   : > { %p1543_p7 = pnand %p1541_p5, %p1538_p3 }
  0x1f   : > { %1546 = shalt.err (!%p1543_p7)
}
  0x20   : > { %s1547_s9 = scalar_lea.vmem %s171_s26, 1024  ;;  %p1555_p1 = scmp.lt.s32.totalorder %s171_s26, %s171_s26 }
  0x21   : > { %p1548_p9 = scmp.ne.s32.totalorder %s171_s26, %s1547_s9  ;;  %p1556_p4 = scmp.lt.s32.totalorder %s1547_s9, %s1547_s9 }
  0x23   : > { %p1550_p10 = pnand %p1548_p9, %p1536_p13  ;;  %p1557_p8 = por %p1556_p4, %p1555_p1 }
  0x25   : > { %p1551_p6 = pneg %p1550_p10 }
  0x27   : > { %p1558_p2 = pnand %p1557_p8, %p1551_p6 }
  0x29   : > { %1561 = shalt.err (!%p1558_p2)
}
  0x2a   : > { %s1681_s10 = smov 64   ;;  %s1682_s11 = smov 4  }
  0x2b   : > { %1444 = dma.hbm_to_vmem [thread:$0]  (!%p1770_p11), %s2011_s1, 1024, %s171_s26, [#allocation7], %s1681_s10, %s1681_s10, %s1682_s11  }
  0x2c   : > { %p41_p1 = scmp.ge.s32.totalorder %s39_s28, 2  ;;  %s48_s25 = sadd.s32 1, %s1666_s14 }
  0x2d   : > { %p55_p2 = scmp.ne.s32.totalorder %s1666_s14, %s1662_s13  ;;  %p56_p4 = scmp.eq.s32.totalorder %s1678_s17, 0 }
  0x2e   : > { %s2039_s28 = smov (%p41_p1, %s39_s28), 0  ;;  %p2025_p8 = scmp.ne.s32.totalorder %s2019_s21, 0 }
  0x2f   : > { %p1800_p6 = por %p56_p4, %p55_p2  ;;  %s43_s30 = ssub.s32 %s1674_s16, %s2039_s28 }
  0x30   : > { %p1806_p10 = por %p2025_p8, %p55_p2  ;;  %p1454_p12 = scmp.lt.s32.totalorder %s1678_s17, 2 }
  0x31   : > { %p46_p11 = scmp.eq.s32.totalorder %s43_s30, 0  ;;  %s190_s26 = sand.u32 1, %s1666_s14  }
  0x32   : > { %s1147_s4 = sshll.u32 %s190_s26, 7  ;;  %s1216_s6 = sshll.u32 %s1674_s16, 11 }
  0x33   : > { %s1815_s5 = scalar_select %p46_p11, %s1666_s14, %s48_s25  }
  0x34   : > { %s1821_s9 = scalar_lea.hbm %s2010_s0, %s1216_s6  ;;  %s194_s21 = scalar_lea.vmem [#allocation3], %s1147_s4 }
  0x35   : > { %s202_s18 = sshll.u32 %s194_s21, 4  ;;  %p1827_p13 = pnand %p1454_p12, %p1800_p6  ;;  %s1823_s18 = int_to_ptr.vmem [resolvable:$true] %s202_s18 }
  0x36   : > { %s1831_s25 = scalar_lea.sflag [#allocation4], %s190_s26  ;;  %s1562_s30 = scalar_lea.hbm %s1821_s9, 2048 }
  0x37   : > { %p1563_p0 = scmp.ne.s32.totalorder %s1821_s9, %s1562_s30  ;;  %p1564_p3 = pneg %p1827_p13 }
  0x38   : > { %s1567_s29 = scalar_lea.hbm %s2010_s0, 4096  ;;  %p1568_p9 = scmp.lt.u32.totalorder %s1821_s9, %s2010_s0 }
  0x39   : > { %p1565_p5 = pnand %p1564_p3, %p1563_p0  ;;  %p1569_p1 = scmp.lt.u32.totalorder %s1567_s29, %s1562_s30 }
  0x3a   : > { %p1571_p4 = scmp.lt.u32.totalorder %s1562_s30, %s1821_s9 }
  0x3b   : > { %p1566_p7 = pneg %p1565_p5  ;;  %p1570_p2 = por %p1569_p1, %p1568_p9 }
  0x3d   : > { %p1572_p6 = por %p1571_p4, %p1570_p2 }
  0x3f   : > { %p1573_p8 = pnand %p1572_p6, %p1566_p7 }
  0x41   : > { %1576 = shalt.err (!%p1573_p8)
}
  0x42   : > { %s1577_s26 = scalar_lea.vmem %s1823_s18, 2048  ;;  %s1683_s21 = smov [#allocation3]  }
  0x43   : > { %p1578_p12 = scmp.ne.s32.totalorder %s1823_s18, %s1577_s26  ;;  %s1582_s4 = sshll.u32 %s1683_s21, 4  ;;  %s1583_s4 = int_to_ptr.vmem [resolvable:$false] %s1582_s4 }
  0x44   : > { %s1584_s6 = scalar_lea.vmem %s1583_s4, 4096  ;;  %p1585_p5 = scmp.lt.s32.totalorder %s1823_s18, %s1583_s4 }
  0x45   : > { %p1580_p11 = pnand %p1578_p12, %p1564_p3  ;;  %p1586_p9 = scmp.lt.s32.totalorder %s1584_s6, %s1577_s26 }
  0x47   : > { %p1581_p0 = pneg %p1580_p11  ;;  %p1587_p1 = por %p1586_p9, %p1585_p5 }
  0x49   : > { %p1588_p2 = pnand %p1587_p1, %p1581_p0 }
  0x4b   : > { %1591 = shalt.err (!%p1588_p2)
}
  0x4c   : > { %1448 = dma.hbm_to_vmem [thread:$0]  (!%p1827_p13), %s1821_s9, 2048, %s1823_s18, %s1831_s25, %s1681_s10, %s1681_s10, %s1682_s11  }
  0x4d   : > { %p2028_p3 = scmp.ne.s32.totalorder %s2022_s24, 0 }
  0x4e   : > { %s1865_s30 = sand.u32 (!%p2028_p3), 1, %s1662_s13   ;;  %p2029_p7 = scmp.ne.s32.totalorder (!%p2028_p3), %s2020_s22, 0 }
  0x4f   : > { %214 = sbr.rel (%p2028_p3) target bundleno = 383 (0x17f), region = 32  ;;  %s1151_s29 = sshll.u32 (!%p2028_p3), %s1865_s30, 7 }
  0x50   : > { %s217_s7 = scalar_lea.sflag (!%p2028_p3), [#allocation4], %s1865_s30  ;;  %s1871_s19 = scalar_lea.vmem (!%p2028_p3), [#allocation3], %s1151_s29 }
  0x56   : > { %1645 = dma.done.wait (%p2029_p7), %s217_s7, 2048  }
  0x57   : > { %1647 = vsyncadd (%p2029_p7), %s217_s7, 4294965248  ;;  %p2030_p13 = scmp.ne.s32.totalorder %s2018_s20, 0 }
  0x59   : > { %1649 = dma.done.wait (%p2030_p13), [#allocation7], 1024  }
  0x5a   : > { %1651 = vsyncadd (%p2030_p13), [#allocation7], 4294966272  ;;  %v1510_v0 = vld [vmem:[#allocation6] sm:$0xff]   ;;  %v1511_v1 = vld [vmem:[#allocation6 + $0x8] sm:$0xff]   ;;  %s1912_s24 = scalar_lea.vmem [#allocation8], %s1151_s29  ;;  %s1249_s10 = sshll.u32 %s1670_s15, 11 }
  0x5b   : > { %1369 = vmatprep.subr.bf16.mxu0 %v1510_v0  ;;  %1417 = vmatprep.subr.bf16.mxu1 %v1510_v0  ;;  %v1512_v2 = vld [vmem:[#allocation6 + $0x10] sm:$0xff]   ;;  %v1513_v3 = vld [vmem:[#allocation6 + $0x18] sm:$0xff]   ;;  %v1518_v4 = vld [vmem:[%s1871_s19] sm:$0xff]   ;;  %s1027_s11 = sshll.u32 %s1912_s24, 4  ;;  %s1955_s15 = scalar_lea.hbm %s2013_s3, %s1249_s10  ;;  %s1957_s11 = int_to_ptr.vmem [resolvable:$true] %s1027_s11 }
  0x5c   : > { %1370 = vmatpush3.bf16.msra.mxu0 %v1510_v0  ;;  %1425 = vmatpush3.bf16.msra.mxu1 %v1510_v0  ;;  %v1519_v5 = vld [vmem:[%s1871_s19 + $0x40] sm:$0xff]   ;;  %v1515_v7 = vld [vmem:[#allocation6 + $0x28] sm:$0xff]   ;;  %v1516_v8 = vld [vmem:[#allocation6 + $0x30] sm:$0xff]   ;;  %s1013_s25 = scalar_lea.sflag [#allocation5], %s1865_s30  ;;  %s1592_s8 = scalar_lea.vmem %s1957_s11, 2048 }
  0x5d   : > { %1371 = vmatprep.subr.bf16.mxu0 %v1511_v1  ;;  %1418 = vmatprep.subr.bf16.mxu1 %v1511_v1  ;;  %v1514_v6 = vld [vmem:[#allocation6 + $0x20] sm:$0xff]   ;;  %v1517_v9 = vld [vmem:[#allocation6 + $0x38] sm:$0xff]   ;;  %v1520_v10 = vld [vmem:[%s1871_s19 + $0x8] sm:$0xff]   ;;  %p1593_p4 = scmp.ne.s32.totalorder %s1957_s11, %s1592_s8  ;;  %s1684_s26 = smov [#allocation8]  }
  0x5e   : > { %1385 = vmatprep.mubr.bf16.mxu0 %v1518_v4  ;;  %1401 = vmatprep.mubr.bf16.mxu1 %v1519_v5  ;;  %v1521_v11 = vld [vmem:[%s1871_s19 + $0x48] sm:$0xff]   ;;  %v1522_v12 = vld [vmem:[%s1871_s19 + $0x10] sm:$0xff]   ;;  %v1524_v14 = vld [vmem:[%s1871_s19 + $0x18] sm:$0xff]   ;;  %s1596_s21 = sshll.u32 %s1684_s26, 4  ;;  %s1597_s21 = int_to_ptr.vmem [resolvable:$false] %s1596_s21 }
  0x5f   : > { %v1523_v13 = vld [vmem:[%s1871_s19 + $0x50] sm:$0xff]   ;;  %v1525_v15 = vld [vmem:[%s1871_s19 + $0x58] sm:$0xff]   ;;  %v1526_v16 = vld [vmem:[%s1871_s19 + $0x20] sm:$0xff]   ;;  %p1594_p6 = pnand %p1593_p4, %p1806_p10  ;;  %s1598_s4 = scalar_lea.vmem %s1597_s21, 4096 }
  0x60   : > { %1372 = vmatpush3.bf16.msra.mxu0 %v1511_v1  ;;  %1426 = vmatpush3.bf16.msra.mxu1 %v1511_v1  ;;  %v1527_v17 = vld [vmem:[%s1871_s19 + $0x60] sm:$0xff]   ;;  %v1528_v18 = vld [vmem:[%s1871_s19 + $0x28] sm:$0xff]   ;;  %v1530_v20 = vld [vmem:[%s1871_s19 + $0x30] sm:$0xff]   ;;  %p1599_p12 = scmp.lt.s32.totalorder %s1957_s11, %s1597_s21  ;;  %p1600_p11 = scmp.lt.s32.totalorder %s1598_s4, %s1592_s8 }
  0x61   : > { %1373 = vmatprep.subr.bf16.mxu0 %v1512_v2  ;;  %1419 = vmatprep.subr.bf16.mxu1 %v1512_v2  ;;  %v1529_v19 = vld [vmem:[%s1871_s19 + $0x68] sm:$0xff]   ;;  %v1531_v21 = vld [vmem:[%s1871_s19 + $0x70] sm:$0xff]   ;;  %v1532_v22 = vld [vmem:[%s1871_s19 + $0x38] sm:$0xff]   ;;  %p1595_p8 = pneg %p1594_p6 }
  0x62   : > { %v1533_v23 = vld [vmem:[%s1871_s19 + $0x78] sm:$0xff]   ;;  %v1900_v24 = vld [vmem:[%s2012_s2] ss:$0 sm:$0xff]  ;;  %p1601_p0 = por %p1600_p11, %p1599_p12 }
  0x64   : > { %1374 = vmatpush3.bf16.msra.mxu0 %v1512_v2  ;;  %1427 = vmatpush3.bf16.msra.mxu1 %v1512_v2  ;;  %p1602_p5 = pnand %p1601_p0, %p1595_p8 }
  0x65   : > { %1375 = vmatprep.subr.bf16.mxu0 %v1513_v3  ;;  %1420 = vmatprep.subr.bf16.mxu1 %v1513_v3 }
  0x68   : > { %1376 = vmatpush3.bf16.msra.mxu0 %v1513_v3  ;;  %1428 = vmatpush3.bf16.msra.mxu1 %v1513_v3 }
  0x69   : > { %1377 = vmatprep.subr.bf16.mxu0 %v1514_v6  ;;  %1421 = vmatprep.subr.bf16.mxu1 %v1514_v6 }
  0x6c   : > { %1378 = vmatpush3.bf16.msra.mxu0 %v1514_v6  ;;  %1429 = vmatpush3.bf16.msra.mxu1 %v1514_v6 }
  0x6d   : > { %1379 = vmatprep.subr.bf16.mxu0 %v1515_v7  ;;  %1422 = vmatprep.subr.bf16.mxu1 %v1515_v7 }
  0x70   : > { %1380 = vmatpush3.bf16.msra.mxu0 %v1515_v7  ;;  %1430 = vmatpush3.bf16.msra.mxu1 %v1515_v7 }
  0x71   : > { %1381 = vmatprep.subr.bf16.mxu0 %v1516_v8  ;;  %1423 = vmatprep.subr.bf16.mxu1 %v1516_v8 }
  0x74   : > { %1382 = vmatpush3.bf16.msra.mxu0 %v1516_v8  ;;  %1431 = vmatpush3.bf16.msra.mxu1 %v1516_v8 }
  0x75   : > { %1383 = vmatprep.subr.bf16.mxu0 %v1517_v9  ;;  %1424 = vmatprep.subr.bf16.mxu1 %v1517_v9 }
  0x78   : > { %1384 = vmatpush3.bf16.msra.mxu0 %v1517_v9  ;;  %1432 = vmatpush3.bf16.msra.mxu1 %v1517_v9 }
  0x7b   : > { %1386 = vmatmul.mubr.bf16.vlgmr.msra.gmra.mrb[0].mxu0 %v1520_v10  ;;  %1402 = vmatmul.mubr.bf16.vlgmr.msra.gmra.mrb[0].mxu1 %v1521_v11 }
  0x7c   : > { %1389 = vmatprep.mubr.bf16.mxu0 %v1522_v12  ;;  %1405 = vmatprep.mubr.bf16.mxu1 %v1523_v13 }
  0x83   : > { %1390 = vmatmul.mubr.bf16.gmra.mrb[4].mxu0 %v1524_v14  ;;  %1406 = vmatmul.mubr.bf16.gmra.mrb[4].mxu1 %v1525_v15 }
  0x84   : > { %1393 = vmatprep.mubr.bf16.mxu0 %v1526_v16  ;;  %1409 = vmatprep.mubr.bf16.mxu1 %v1527_v17 }
  0x8b   : > { %1394 = vmatmul.mubr.bf16.gmra.mrb[8].mxu0 %v1528_v18  ;;  %1410 = vmatmul.mubr.bf16.gmra.mrb[8].mxu1 %v1529_v19 }
  0x8c   : > { %1397 = vmatprep.mubr.bf16.mxu0 %v1530_v20  ;;  %1413 = vmatprep.mubr.bf16.mxu1 %v1531_v21 }
  0x93   : > { %1398 = vmatmul.mubr.bf16.gmra.mrb[12].mxu0 %v1532_v22  ;;  %1414 = vmatmul.mubr.bf16.gmra.mrb[12].mxu1 %v1533_v23 }
 0x14e   : > { %v1387_v25 = vpop.f32.mrb[0].mxu0  ;;  %v1403_v26 = vpop.f32.mrb[0].mxu1 }
 0x14f   : > { %v623_v27 = vadd.f32 %v1387_v25, %v1900_v24  ;;  %v639_v28 = vadd.f32 %v1403_v26, %v1900_v24  ;;  %v483_v29 = vpop.f32.mrb[1].mxu0  ;;  %v547_v30 = vpop.f32.mrb[1].mxu1 }
 0x150   : > { %v621_v31 = vadd.f32 %v1900_v24, %v483_v29  ;;  %v637_v32 = vadd.f32 %v1900_v24, %v547_v30  ;;  %v1388_v33 = vpop.f32.mrb[2].mxu0  ;;  %v1404_v34 = vpop.f32.mrb[2].mxu1 }
 0x151   : > { %v624_v35 = vadd.f32 %v1388_v33, %v1900_v24  ;;  %v640_v36 = vadd.f32 %v1404_v34, %v1900_v24  ;;  %v486_v37 = vpop.f32.mrb[3].mxu0  ;;  %v550_v38 = vpop.f32.mrb[3].mxu1  ;;  %v822_v41 = vmax.f32 %v623_v27, 0.0  ;;  %v838_v42 = vmax.f32 %v639_v28, 0.0 }
 0x152   : > { %v622_v39 = vadd.f32 %v1900_v24, %v486_v37  ;;  %v638_v40 = vadd.f32 %v1900_v24, %v550_v38  ;;  %v820_v45 = vmax.f32 %v621_v31, 0.0  ;;  %v836_v46 = vmax.f32 %v637_v32, 0.0 }
 0x153   : > { %v823_v43 = vmax.f32 %v624_v35, 0.0  ;;  %v839_v44 = vmax.f32 %v640_v36, 0.0 }
 0x154   : > { %v821_v47 = vmax.f32 %v622_v39, 0.0  ;;  %v837_v48 = vmax.f32 %v638_v40, 0.0 }
 0x155   : > { %v1258_v49 = vpack.c.bf16 %v823_v43, %v822_v41  ;;  %v1298_v50 = vpack.c.bf16 %v839_v44, %v838_v42 }
 0x156   : > { %v1253_v51 = vpack.c.bf16 %v821_v47, %v820_v45  ;;  %v1293_v52 = vpack.c.bf16 %v837_v48, %v836_v46  ;;  %v1391_v53 = vpop.f32.mrb[4].mxu0  ;;  %v1407_v54 = vpop.f32.mrb[4].mxu1 }
 0x157   : > { %1330 = vst [vmem:[%s1912_s24 + $0x8] sm:$0xff] %v1258_v49   ;;  %1338 = vst [vmem:[%s1912_s24 + $0x48] sm:$0xff] %v1298_v50   ;;  %v627_v55 = vadd.f32 %v1391_v53, %v1900_v24  ;;  %v643_v56 = vadd.f32 %v1407_v54, %v1900_v24  ;;  %v499_v57 = vpop.f32.mrb[5].mxu0  ;;  %v563_v58 = vpop.f32.mrb[5].mxu1 }
 0x158   : > { %1254 = vst [vmem:[%s1912_s24] sm:$0xff] %v1253_v51   ;;  %1337 = vst [vmem:[%s1912_s24 + $0x40] sm:$0xff] %v1293_v52   ;;  %v625_v59 = vadd.f32 %v1900_v24, %v499_v57  ;;  %v641_v60 = vadd.f32 %v1900_v24, %v563_v58  ;;  %v1392_v61 = vpop.f32.mrb[6].mxu0  ;;  %v1408_v62 = vpop.f32.mrb[6].mxu1 }
 0x159   : > { %v628_v63 = vadd.f32 %v1392_v61, %v1900_v24  ;;  %v644_v0 = vadd.f32 %v1408_v62, %v1900_v24  ;;  %v502_v1 = vpop.f32.mrb[7].mxu0  ;;  %v566_v2 = vpop.f32.mrb[7].mxu1  ;;  %v826_v5 = vmax.f32 %v627_v55, 0.0  ;;  %v842_v6 = vmax.f32 %v643_v56, 0.0 }
 0x15a   : > { %v626_v3 = vadd.f32 %v1900_v24, %v502_v1  ;;  %v642_v4 = vadd.f32 %v1900_v24, %v566_v2  ;;  %v824_v9 = vmax.f32 %v625_v59, 0.0  ;;  %v840_v10 = vmax.f32 %v641_v60, 0.0 }
 0x15b   : > { %v827_v7 = vmax.f32 %v628_v63, 0.0  ;;  %v843_v8 = vmax.f32 %v644_v0, 0.0 }
 0x15c   : > { %v825_v11 = vmax.f32 %v626_v3, 0.0  ;;  %v841_v12 = vmax.f32 %v642_v4, 0.0 }
 0x15d   : > { %v1268_v13 = vpack.c.bf16 %v827_v7, %v826_v5  ;;  %v1308_v14 = vpack.c.bf16 %v843_v8, %v842_v6 }
 0x15e   : > { %v1263_v15 = vpack.c.bf16 %v825_v11, %v824_v9  ;;  %v1303_v16 = vpack.c.bf16 %v841_v12, %v840_v10  ;;  %v1395_v17 = vpop.f32.mrb[8].mxu0  ;;  %v1411_v18 = vpop.f32.mrb[8].mxu1 }
 0x15f   : > { %1332 = vst [vmem:[%s1912_s24 + $0x18] sm:$0xff] %v1268_v13   ;;  %1340 = vst [vmem:[%s1912_s24 + $0x58] sm:$0xff] %v1308_v14   ;;  %v631_v19 = vadd.f32 %v1395_v17, %v1900_v24  ;;  %v647_v20 = vadd.f32 %v1411_v18, %v1900_v24  ;;  %v515_v21 = vpop.f32.mrb[9].mxu0  ;;  %v579_v22 = vpop.f32.mrb[9].mxu1 }
 0x160   : > { %1331 = vst [vmem:[%s1912_s24 + $0x10] sm:$0xff] %v1263_v15   ;;  %1339 = vst [vmem:[%s1912_s24 + $0x50] sm:$0xff] %v1303_v16   ;;  %v629_v23 = vadd.f32 %v1900_v24, %v515_v21  ;;  %v645_v25 = vadd.f32 %v1900_v24, %v579_v22  ;;  %v1396_v26 = vpop.f32.mrb[10].mxu0  ;;  %v1412_v27 = vpop.f32.mrb[10].mxu1 }
 0x161   : > { %v632_v28 = vadd.f32 %v1396_v26, %v1900_v24  ;;  %v648_v29 = vadd.f32 %v1412_v27, %v1900_v24  ;;  %v518_v30 = vpop.f32.mrb[11].mxu0  ;;  %v582_v31 = vpop.f32.mrb[11].mxu1  ;;  %v830_v34 = vmax.f32 %v631_v19, 0.0  ;;  %v846_v35 = vmax.f32 %v647_v20, 0.0 }
 0x162   : > { %v630_v32 = vadd.f32 %v1900_v24, %v518_v30  ;;  %v646_v33 = vadd.f32 %v1900_v24, %v582_v31  ;;  %v828_v38 = vmax.f32 %v629_v23, 0.0  ;;  %v844_v39 = vmax.f32 %v645_v25, 0.0 }
 0x163   : > { %v831_v36 = vmax.f32 %v632_v28, 0.0  ;;  %v847_v37 = vmax.f32 %v648_v29, 0.0 }
 0x164   : > { %v829_v40 = vmax.f32 %v630_v32, 0.0  ;;  %v845_v41 = vmax.f32 %v646_v33, 0.0 }
 0x165   : > { %v1278_v42 = vpack.c.bf16 %v831_v36, %v830_v34  ;;  %v1318_v43 = vpack.c.bf16 %v847_v37, %v846_v35 }
 0x166   : > { %v1273_v44 = vpack.c.bf16 %v829_v40, %v828_v38  ;;  %v1313_v45 = vpack.c.bf16 %v845_v41, %v844_v39  ;;  %v1399_v46 = vpop.f32.mrb[12].mxu0  ;;  %v1415_v47 = vpop.f32.mrb[12].mxu1 }
 0x167   : > { %1334 = vst [vmem:[%s1912_s24 + $0x28] sm:$0xff] %v1278_v42   ;;  %1342 = vst [vmem:[%s1912_s24 + $0x68] sm:$0xff] %v1318_v43   ;;  %v635_v48 = vadd.f32 %v1399_v46, %v1900_v24  ;;  %v651_v49 = vadd.f32 %v1415_v47, %v1900_v24  ;;  %v531_v50 = vpop.f32.mrb[13].mxu0  ;;  %v595_v51 = vpop.f32.mrb[13].mxu1 }
 0x168   : > { %1333 = vst [vmem:[%s1912_s24 + $0x20] sm:$0xff] %v1273_v44   ;;  %1341 = vst [vmem:[%s1912_s24 + $0x60] sm:$0xff] %v1313_v45   ;;  %v633_v52 = vadd.f32 %v1900_v24, %v531_v50  ;;  %v649_v53 = vadd.f32 %v1900_v24, %v595_v51  ;;  %v1400_v54 = vpop.f32.mrb[14].mxu0  ;;  %v1416_v55 = vpop.f32.mrb[14].mxu1 }
 0x169   : > { %v636_v56 = vadd.f32 %v1400_v54, %v1900_v24  ;;  %v652_v57 = vadd.f32 %v1416_v55, %v1900_v24  ;;  %v534_v58 = vpop.f32.mrb[15].mxu0  ;;  %v598_v59 = vpop.f32.mrb[15].mxu1  ;;  %v834_v62 = vmax.f32 %v635_v48, 0.0  ;;  %v850_v63 = vmax.f32 %v651_v49, 0.0 }
 0x16a   : > { %v634_v60 = vadd.f32 %v1900_v24, %v534_v58  ;;  %v650_v61 = vadd.f32 %v1900_v24, %v598_v59  ;;  %v832_v2 = vmax.f32 %v633_v52, 0.0  ;;  %v848_v3 = vmax.f32 %v649_v53, 0.0 }
 0x16b   : > { %v835_v0 = vmax.f32 %v636_v56, 0.0  ;;  %v851_v1 = vmax.f32 %v652_v57, 0.0 }
 0x16c   : > { %v833_v4 = vmax.f32 %v634_v60, 0.0  ;;  %v849_v5 = vmax.f32 %v650_v61, 0.0 }
 0x16d   : > { %v1288_v6 = vpack.c.bf16 %v835_v0, %v834_v62  ;;  %v1328_v7 = vpack.c.bf16 %v851_v1, %v850_v63 }
 0x16e   : > { %v1283_v24 = vpack.c.bf16 %v833_v4, %v832_v2  ;;  %v1323_v8 = vpack.c.bf16 %v849_v5, %v848_v3 }
 0x16f   : > { %1336 = vst [vmem:[%s1912_s24 + $0x38] sm:$0xff] %v1288_v6   ;;  %1344 = vst [vmem:[%s1912_s24 + $0x78] sm:$0xff] %v1328_v7  }
 0x170   : > { %1335 = vst [vmem:[%s1912_s24 + $0x30] sm:$0xff] %v1283_v24   ;;  %1343 = vst [vmem:[%s1912_s24 + $0x70] sm:$0xff] %v1323_v8  }
 0x171   : > { %1605 = shalt.err (!%p1602_p5)
}
 0x172   : > { %s1606_s6 = scalar_lea.hbm %s1955_s15, 2048  ;;  %s1610_s19 = scalar_lea.hbm %s2013_s3, 4096 }
 0x173   : > { %p1607_p9 = scmp.ne.s32.totalorder %s1955_s15, %s1606_s6  ;;  %p1611_p3 = scmp.lt.u32.totalorder %s1955_s15, %s2013_s3 }
 0x174   : > { %p1612_p7 = scmp.lt.u32.totalorder %s1610_s19, %s1606_s6  ;;  %p1614_p4 = scmp.lt.u32.totalorder %s1606_s6, %s1955_s15 }
 0x175   : > { %p1608_p1 = pnand %p1607_p9, %p1806_p10 }
 0x176   : > { %p1613_p13 = por %p1612_p7, %p1611_p3 }
 0x177   : > { %p1609_p2 = pneg %p1608_p1 }
 0x178   : > { %p1615_p6 = por %p1614_p4, %p1613_p13 }
 0x17a   : > { %p1616_p8 = pnand %p1615_p6, %p1609_p2 }
 0x17c   : > { %1619 = shalt.err (!%p1616_p8)
}
 0x17d   : > { %s1685_s24 = smov 64   ;;  %s1686_s10 = smov 4  }
 0x17e   : > { %1439 = dma.vmem_to_hbm [thread:$0]  (%p1806_p10), %s1957_s11, 2048, %s1955_s15, %s1013_s25, %s1685_s24, %s1685_s24, %s1686_s10  }
 0x17f PF: > { %s1042_s9 = sand.u32 1, %s1658_s12   ;;  %p2031_p12 = scmp.ne.s32.totalorder %s2021_s23, 0 }
 0x180   : > { %p2032_p11 = scmp.ge.s32.totalorder %s1678_s17, 2  ;;  %s1043_s18 = scalar_lea.sflag [#allocation5], %s1042_s9 }
 0x182   : > { %p1450_p0 = pnand %p2032_p11, %p2031_p12 }
 0x184   : > { %1653 = dma.done.wait (!%p1450_p0), %s1043_s18, 2048  }
 0x185   : > { %1655 = vsyncadd (!%p1450_p0), %s1043_s18, 4294965248  ;;  %s20_s17 = sadd.s32 1, %s1678_s17   ;;  %s2033_s12 = smov %s1662_s13 }
 0x186   : > { %p17_p5 = scmp.ge.s32.totalorder %s20_s17, 4   ;;  %s2034_s13 = smov %s1666_s14 }
 0x187   : > { %s2035_s14 = smov %s1815_s5  ;;  %s2036_s15 = smov %s1674_s16 }
 0x188   : > { %s2037_s16 = smov %s2039_s28  ;;  %19 = sbr.rel (!%p17_p5) target bundleno = 7 (0x7), region = 97 }
 0x18f   :  { %1048 = vsyncpa [#allocation4], 1 }
 0x190   :  { %1050 = vsyncpa [#allocation4 + $0x1], 1 }
 0x191   :  { %1051 = vsyncpa [#allocation7], 1 }
 0x192   :  { %1052 = vsyncpa [#allocation5], 1 }
 0x193   :  { %1054 = vsyncpa [#allocation5 + $0x1], 1 }

</bundles_post_ra>
